<compile_context>
chip_gen: v6e
topology: v6e:2x2x1
jax: 0.10.0
libtpu: 0.0.40
codegen_flags: <defaults>
</compile_context>

<pallas_src>
import functools

import numpy as np
import jax
import jax.numpy as jnp
from jax.experimental import pallas as pl
from jax.experimental.pallas import tpu as pltpu

# ---- Wav2Mel hyperparameters (same as the PyTorch module defaults) ----
SR = 16000
FFT_WINDOW_MS = 25.0
FFT_HOP_MS = 10.0
N_FFT = int(SR * FFT_WINDOW_MS / 1000)     # 400
HOP = int(SR * FFT_HOP_MS / 1000)          # 160
N_MELS = 40
F_MIN = 50.0
F_MAX = SR / 2.0
N_FREQ = N_FFT // 2 + 1                    # 201
NORM_DB = -3.0

# Padded / lane-aligned sizes for the TPU kernel.
PAD_FFT = 512                              # K dim: 4x128 (v5e) == 2x256 (v6e/v7x)
PAD_FREQ = 256                             # padded n_freq (lane-tile aligned split point)
PAD_MELS = 128                             # lane-dense output width
TILE_T_MAX = 512                           # max time frames per grid step


# ---------------- parameter construction (deterministic, in-script) ----------
def _hz_to_mel(f):
    return 2595.0 * np.log10(1.0 + f / 700.0)


def _mel_to_hz(m):
    return 700.0 * (10.0 ** (m / 2595.0) - 1.0)


def _make_mel_fb_padded():
    """torchaudio melscale_fbanks (norm=None, 'htk'), zero-padded to (PAD_FREQ, PAD_MELS)."""
    all_freqs = np.linspace(0, SR // 2, N_FREQ)
    m_pts = np.linspace(_hz_to_mel(F_MIN), _hz_to_mel(F_MAX), N_MELS + 2)
    f_pts = _mel_to_hz(m_pts)
    f_diff = f_pts[1:] - f_pts[:-1]
    slopes = f_pts[None, :] - all_freqs[:, None]        # (n_freq, n_mels + 2)
    down = -slopes[:, :-2] / f_diff[:-1]
    up = slopes[:, 2:] / f_diff[1:]
    fb = np.maximum(0.0, np.minimum(down, up)).astype(np.float32)   # (201, 40)
    fb_pad = np.zeros((PAD_FREQ, PAD_MELS), dtype=np.float32)
    fb_pad[:N_FREQ, :N_MELS] = fb
    return fb_pad


def _make_dft_matrix():
    """Hann-window-folded cos|sin DFT slab, shape (PAD_FFT, 2*PAD_FREQ).

    Columns [0, N_FREQ)            : window * cos(2*pi*n*k/N)
    Columns [PAD_FREQ, PAD_FREQ+N_FREQ): -window * sin(2*pi*n*k/N)
    Everything else zero (contributes nothing numerically).
    """
    n = np.arange(N_FFT, dtype=np.float64)[:, None]
    k = np.arange(N_FREQ, dtype=np.float64)[None, :]
    ang = 2.0 * np.pi * n * k / N_FFT
    win = 0.5 - 0.5 * np.cos(2.0 * np.pi * np.arange(N_FFT) / N_FFT)   # periodic hann
    cosm = (win[:, None] * np.cos(ang))
    sinm = (-win[:, None] * np.sin(ang))
    dft = np.zeros((PAD_FFT, 2 * PAD_FREQ), dtype=np.float32)
    dft[:N_FFT, :N_FREQ] = cosm
    dft[:N_FFT, PAD_FREQ:PAD_FREQ + N_FREQ] = sinm
    return dft


@functools.lru_cache(maxsize=1)
def _constants():
    """Device-resident constant matrices, built once and cached across calls."""
    dft = jnp.asarray(_make_dft_matrix(), dtype=jnp.bfloat16)   # (512, 512) bf16
    melfb = jnp.asarray(_make_mel_fb_padded())                  # (256, 128) f32
    return dft, melfb


# ---------------- Pallas kernel ----------------------------------------------
def wav2mel_kernel(gain2_ref, frames_ref, dft_ref, melfb_ref, out_ref):
    # frames_ref: (TILE_T, PAD_FFT) bf16  -- windowed DFT via one MXU matmul.
    f = frames_ref[...]
    y = jnp.dot(f, dft_ref[...], preferred_element_type=jnp.float32)   # (T, 512) f32
    re = y[:, :PAD_FREQ]                                                # lane-aligned views
    im = y[:, PAD_FREQ:]
    # |STFT|^2 with the sox peak-norm gain folded in (gain^2 from SMEM scalar).
    power = (re * re + im * im) * gain2_ref[0]                          # (T, 256) f32
    mel = jnp.dot(power, melfb_ref[...], preferred_element_type=jnp.float32)  # (T, 128)
    out_ref[...] = jnp.log(jnp.maximum(mel, 1e-9))


# ---------------- wrapper -----------------------------------------------------
def wav2mel(wav):
    """wav: (channels, samples) float32 -> (num_frames, n_mels) float32 log-mel."""
    # --- partial SoxEffects: mixdown to mono + peak-normalize to -3 dB ---
    # TODO(synk): sox 'rate' resampling and 'silence' trimming are data-dependent,
    # variable-length audio preprocessing with no clean Pallas equivalent; the
    # input is assumed to already be at SR with silence removed.
    mono = jnp.mean(wav.astype(jnp.float32), axis=0)
    peak = jnp.max(jnp.abs(mono))
    gain = (10.0 ** (NORM_DB / 20.0)) / jnp.maximum(peak, 1e-12)
    gain2 = jnp.reshape(gain * gain, (1,)).astype(jnp.float32)   # SMEM scalar input

    num_samples = int(mono.shape[0])
    pad = N_FFT // 2
    padded = jnp.pad(mono, (pad, pad), mode="reflect")   # center=True, pad_mode='reflect'

    num_frames = 1 + num_samples // HOP
    idx = np.arange(num_frames)[:, None] * HOP + np.arange(N_FFT)[None, :]
    frames = padded[idx]                                  # (T, N_FFT) f32
    # NOTE: the overlapping-frame gather stays in the wrapper (kernel is
    # MXU-bound at these tile sizes; in-kernel framing is a secondary win).

    # Adaptive time tile: as close to TILE_T_MAX as possible, multiple of 16
    # (bf16 sublane packing), minimal zero-frame padding, grid = n_tiles steps.
    n_tiles = (num_frames + TILE_T_MAX - 1) // TILE_T_MAX
    per_tile = (num_frames + n_tiles - 1) // n_tiles
    tile_t = ((per_tile + 15) // 16) * 16
    t_padded = n_tiles * tile_t

    # Pad frames: rows up to t_padded, K 400 -> 512; cast to bf16 for the MXU.
    frames = jnp.pad(
        frames, ((0, t_padded - num_frames), (0, PAD_FFT - N_FFT))
    ).astype(jnp.bfloat16)

    dft, melfb = _constants()

    out = pl.pallas_call(
        wav2mel_kernel,
        out_shape=jax.ShapeDtypeStruct((t_padded, PAD_MELS), jnp.float32),
        grid_spec=pltpu.PrefetchScalarGridSpec(
            num_scalar_prefetch=0,
            grid=(n_tiles,),
            in_specs=[
                pl.BlockSpec(memory_space=pltpu.MemorySpace.SMEM),            # gain^2 scalar
                pl.BlockSpec((tile_t, PAD_FFT), lambda i: (i, 0)),            # frames: tiled over time
                pl.BlockSpec((PAD_FFT, 2 * PAD_FREQ), lambda i: (0, 0)),      # fused cos|sin DFT (resident)
                pl.BlockSpec((PAD_FREQ, PAD_MELS), lambda i: (0, 0)),         # mel filterbank (resident)
            ],
            out_specs=pl.BlockSpec((tile_t, PAD_MELS), lambda i: (i, 0)),
        ),
        compiler_params=pltpu.CompilerParams(
            dimension_semantics=("parallel",),
        ),
    )(gain2, frames, dft, melfb)

    # Strip the zero-padded tail frames / mel lanes.
    return out[:num_frames, :N_MELS]


if __name__ == "__main__":
    key = jax.random.PRNGKey(0)
    # Small synthetic waveform: 1 channel, 4000 samples (~0.25 s @ 16 kHz).
    wav = jax.random.uniform(key, (1, 4000), dtype=jnp.float32, minval=-1.0, maxval=1.0)

    mel = wav2mel(wav)
    jax.block_until_ready(mel)

    expected_frames = 1 + wav.shape[1] // HOP
    assert mel.shape == (expected_frames, N_MELS), mel.shape
    assert mel.dtype == jnp.float32
    assert bool(jnp.all(jnp.isfinite(mel)))
    print("KERNEL_OK")
</pallas_src>

<mosaic_0001>
module attributes {stable_mosaic.version = 11 : i64} {
  func.func @wav2mel_kernel(%arg0: i32, %arg1: memref<1xf32, #tpu.memory_space<smem>>, %arg2: memref<32x512xbf16, #tpu.memory_space<vmem>>, %arg3: memref<512x512xbf16, #tpu.memory_space<vmem>>, %arg4: memref<256x128xf32, #tpu.memory_space<vmem>>, %arg5: memref<32x128xf32, #tpu.memory_space<vmem>>) attributes {dimension_semantics = [#tpu.dimension_semantics<parallel>], iteration_bounds = array<i64: 1>, scalar_prefetch = 0 : i64, scratch_operands = 0 : i64, tpu.core_type = #tpu.core_type<tc>, window_params = [{transform_indices = @transform_0, window_bounds = array<i64: 1>}, {transform_indices = @transform_1, window_bounds = array<i64: 32, 512>}, {pipeline_mode = #tpu.pipeline_mode<synchronous>, transform_indices = @transform_2, window_bounds = array<i64: 512, 512>}, {pipeline_mode = #tpu.pipeline_mode<synchronous>, transform_indices = @transform_3, window_bounds = array<i64: 256, 128>}, {transform_indices = @transform_4, window_bounds = array<i64: 32, 128>}]} {
    %c0 = arith.constant 0 : index
    %c0_0 = arith.constant 0 : index
    %0 = vector.load %arg2[%c0, %c0_0] : memref<32x512xbf16, #tpu.memory_space<vmem>>, vector<32x512xbf16>
    %c0_1 = arith.constant 0 : index
    %c0_2 = arith.constant 0 : index
    %1 = vector.load %arg3[%c0_1, %c0_2] : memref<512x512xbf16, #tpu.memory_space<vmem>>, vector<512x512xbf16>
    %cst = arith.constant dense<0.000000e+00> : vector<32x512xf32>
    %2 = tpu.matmul %0, %1, %cst {dimension_numbers = #tpu.dot_dimension_numbers<[1], [0], [0], [1], [0, 0, 1, 1], [], []>} : vector<32x512xbf16>, vector<512x512xbf16>, vector<32x512xf32> -> vector<32x512xf32>
    %3 = vector.extract_strided_slice %2 {offsets = [0, 0], sizes = [32, 256], strides = [1, 1]} : vector<32x512xf32> to vector<32x256xf32>
    %4 = vector.extract_strided_slice %2 {offsets = [0, 256], sizes = [32, 256], strides = [1, 1]} : vector<32x512xf32> to vector<32x256xf32>
    %5 = arith.mulf %3, %3 : vector<32x256xf32>
    %6 = arith.mulf %4, %4 : vector<32x256xf32>
    %7 = arith.addf %5, %6 : vector<32x256xf32>
    %c0_3 = arith.constant 0 : index
    %8 = memref.load %arg1[%c0_3] : memref<1xf32, #tpu.memory_space<smem>>
    %9 = vector.broadcast %8 : f32 to vector<32x256xf32>
    %10 = arith.mulf %7, %9 : vector<32x256xf32>
    %c0_4 = arith.constant 0 : index
    %c0_5 = arith.constant 0 : index
    %11 = vector.load %arg4[%c0_4, %c0_5] : memref<256x128xf32, #tpu.memory_space<vmem>>, vector<256x128xf32>
    %cst_6 = arith.constant dense<0.000000e+00> : vector<32x128xf32>
    %12 = tpu.matmul %10, %11, %cst_6 {dimension_numbers = #tpu.dot_dimension_numbers<[1], [0], [0], [1], [0, 0, 1, 1], [], []>} : vector<32x256xf32>, vector<256x128xf32>, vector<32x128xf32> -> vector<32x128xf32>
    %cst_7 = arith.constant 9.99999971E-10 : f32
    %13 = vector.broadcast %cst_7 : f32 to vector<32x128xf32>
    %14 = arith.maximumf %12, %13 : vector<32x128xf32>
    %15 = math.log %14 : vector<32x128xf32>
    %c0_8 = arith.constant 0 : index
    %c0_9 = arith.constant 0 : index
    %16 = vector.load %arg5[%c0_8, %c0_9] : memref<32x128xf32, #tpu.memory_space<vmem>>, vector<32x128xf32>
    tpu.vector_store %arg5[%c0_8, %c0_9], %15 {strides = array<i32>} : memref<32x128xf32, #tpu.memory_space<vmem>>, vector<32x128xf32>,
    return
  }
  func.func @transform_0(%arg0: i32) -> i32 {
    %c0_i32 = arith.constant 0 : i32
    %c0_i32_0 = arith.constant 0 : i32
    return %c0_i32 : i32
  }
  func.func @transform_1(%arg0: i32) -> (i32, i32) {
    %c0_i32 = arith.constant 0 : i32
    %c0_i32_0 = arith.constant 0 : i32
    return %arg0, %c0_i32 : i32, i32
  }
  func.func @transform_2(%arg0: i32) -> (i32, i32) {
    %c0_i32 = arith.constant 0 : i32
    %c0_i32_0 = arith.constant 0 : i32
    %c0_i32_1 = arith.constant 0 : i32
    return %c0_i32, %c0_i32_0 : i32, i32
  }
  func.func @transform_3(%arg0: i32) -> (i32, i32) {
    %c0_i32 = arith.constant 0 : i32
    %c0_i32_0 = arith.constant 0 : i32
    %c0_i32_1 = arith.constant 0 : i32
    return %c0_i32, %c0_i32_0 : i32, i32
  }
  func.func @transform_4(%arg0: i32) -> (i32, i32) {
    %c0_i32 = arith.constant 0 : i32
    %c0_i32_0 = arith.constant 0 : i32
    return %arg0, %c0_i32 : i32, i32
  }
}

</mosaic_0001>

<bundles_post_ra>
// kernel: tpu_custom_call.1
= control target key start
LH: loop header
LB: loop body
LE: loop exit
PB: predicated region body
PF: predicated region fallthrough
CT: control target
= control target key end

     0   :  { %10 = vsyncpa [#allocation4], 0  ;;  %s1877_s0 = inlined_call_operand.<no memory space> [shape: f32[1], index: 0, kind: input, shape index: {}]   ;;  %s1878_s1 = inlined_call_operand.hbm [shape: bf16[32,512], index: 1, kind: input, shape index: {}]   ;;  %s1879_s2 = inlined_call_operand.hbm [shape: bf16[512,512], index: 2, kind: input, shape index: {}]   ;;  %s1880_s3 = inlined_call_operand.hbm [shape: f32[256,128], index: 3, kind: input, shape index: {}]   ;;  %s1881_s4 = inlined_call_operand.hbm [shape: f32[32,128], index: 4, kind: output, shape index: {}]  }
   0x1   :  { %11 = vsyncpa [#allocation7], 0 }
   0x2   :  { %12 = vsyncpa [#allocation5], 0  ;;  %s1791_s15 = smov [#allocation6]   ;;  %s1792_s17 = smov [#allocation3]  }
   0x3   :  { %s32_s16 = sshll.u32 %s1791_s15, 4  ;;  %s20_s18 = sshll.u32 %s1792_s17, 4  ;;  %s33_s16 = int_to_ptr.vmem [resolvable:$true] %s32_s16  ;;  %s21_s18 = int_to_ptr.vmem [resolvable:$true] %s20_s18 }
   0x4   :  { %s1713_s19 = scalar_lea.vmem %s33_s16, 16384  ;;  %p1718_p1 = scmp.lt.s32.totalorder %s33_s16, %s33_s16 }
   0x5   :  { %p1714_p0 = scmp.ne.s32.totalorder %s33_s16, %s1713_s19  ;;  %p1719_p2 = scmp.lt.s32.totalorder %s1713_s19, %s1713_s19 }
   0x7   :  { %p1720_p3 = por %p1719_p2, %p1718_p1 }
   0x9   :  { %p1721_p4 = pnand %p1720_p3, %p1714_p0 }
   0xb   :  { %1724 = shalt.err (!%p1721_p4)
}
   0xc   :  { %s1793_s20 = smov 256   ;;  %s1794_s21 = smov 16  }
   0xd   :  { %38 = dma.hbm_to_vmem [thread:$0]  %s1879_s2, 16384, %s33_s16, [#allocation7], %s1793_s20, %s1793_s20, %s1794_s21  }
   0xe   :  { %s1733_s24 = scalar_lea.vmem %s21_s18, 1024  ;;  %p1738_p6 = scmp.lt.s32.totalorder %s21_s18, %s21_s18 }
   0xf   :  { %p1734_p5 = scmp.ne.s32.totalorder %s21_s18, %s1733_s24  ;;  %p1739_p7 = scmp.lt.s32.totalorder %s1733_s24, %s1733_s24 }
  0x11   :  { %p1740_p8 = por %p1739_p7, %p1738_p6 }
  0x13   :  { %p1741_p9 = pnand %p1740_p8, %p1734_p5 }
  0x15   :  { %1744 = shalt.err (!%p1741_p9)
}
  0x16   :  { %26 = dma.hbm_to_vmem [thread:$0]  %s1878_s1, 1024, %s21_s18, [#allocation4], %s1793_s20, %s1793_s20, %s1794_s21  }
  0x17   :  { %s1795_s27 = smov [#allocation8]  }
  0x18   :  { %s44_s28 = sshll.u32 %s1795_s27, 4  ;;  %s45_s28 = int_to_ptr.vmem [resolvable:$true] %s44_s28 }
  0x19   :  { %s1753_s29 = scalar_lea.vmem %s45_s28, 4096  ;;  %p1758_p11 = scmp.lt.s32.totalorder %s45_s28, %s45_s28 }
  0x1a   :  { %p1754_p10 = scmp.ne.s32.totalorder %s45_s28, %s1753_s29  ;;  %p1759_p12 = scmp.lt.s32.totalorder %s1753_s29, %s1753_s29 }
  0x1c   :  { %p1760_p13 = por %p1759_p12, %p1758_p11 }
  0x1e   :  { %p1761_p0 = pnand %p1760_p13, %p1754_p10 }
  0x20   :  { %1764 = shalt.err (!%p1761_p0)
}
  0x21   :  { %s1796_s2 = smov 128   ;;  %s1797_s30 = smov 8  }
  0x22   :  { %50 = dma.hbm_to_vmem [thread:$0]  %s1880_s3, 4096, %s45_s28, [#allocation7], %s1796_s2, %s1796_s2, %s1797_s30  }
  0x23   :  { %1785 = dma.done.wait [#allocation4], 1024  }
  0x24   :  { %1786 = vsyncadd [#allocation4], 4294966272 }
  0x25   :  { %1787 = dma.done.wait [#allocation7], 20480  }
  0x26   :  { %1788 = vsyncadd [#allocation7], 4294946816  ;;  %v1493_v0 = vld [vmem:[#allocation6 + $0xe4] ss:$16 sps:$4 sm:$0xff]   ;;  %v1497_v2 = vld [vmem:[#allocation6 + $0xe0] ss:$16 sps:$4 sm:$0xff]  }
  0x27   :  { %v1495_v1 = vld [vmem:[#allocation6 + $0x2e4] ss:$16 sps:$4 sm:$0xff]   ;;  %876 = vmatprep.subr.bf16.mxu0 %v1493_v0  ;;  %v1498_v3 = vld [vmem:[#allocation6 + $0x2e0] ss:$16 sps:$4 sm:$0xff]   ;;  %v1838_v51 = vld [vmem:[#allocation3 + $0xc] ss:$16 sps:$4 sm:$0xff]  }
  0x28   :  { %929 = vmatprep.subr.bf16.mxu1 %v1495_v1  ;;  %v1499_v4 = vld [vmem:[#allocation6 + $0xc4] ss:$16 sps:$4 sm:$0xff]   ;;  %877 = vmatpush1.bf16.msra.mxu0 %v1497_v2  ;;  %v1503_v6 = vld [vmem:[#allocation6 + $0xc0] ss:$16 sps:$4 sm:$0xff]   ;;  %v1597_v2 = vld [vmem:[#allocation6 + $0xec] ss:$16 sps:$4 sm:$0xff]  }
  0x29   :  { %930 = vmatpush1.bf16.msra.mxu1 %v1498_v3  ;;  %v1501_v5 = vld [vmem:[#allocation6 + $0x2c4] ss:$16 sps:$4 sm:$0xff]   ;;  %878 = vmatprep.subr.bf16.mxu0 %v1499_v4  ;;  %v1504_v7 = vld [vmem:[#allocation6 + $0x2c0] ss:$16 sps:$4 sm:$0xff]   ;;  %v1600_v3 = vld [vmem:[#allocation6 + $0x2ec] ss:$16 sps:$4 sm:$0xff]  }
  0x2a   :  { %931 = vmatprep.subr.bf16.mxu1 %v1501_v5  ;;  %v1505_v8 = vld [vmem:[#allocation6 + $0xa4] ss:$16 sps:$4 sm:$0xff]   ;;  %v1509_v10 = vld [vmem:[#allocation6 + $0xa0] ss:$16 sps:$4 sm:$0xff]   ;;  %961 = vmatprep.mubr.bf16.mxu1 %v1838_v51  ;;  %v1844_v5 = vld [vmem:[#allocation3 + $0x8] ss:$16 sps:$4 sm:$0xff]  }
  0x2b   :  { %v1507_v9 = vld [vmem:[#allocation6 + $0x2a4] ss:$16 sps:$4 sm:$0xff]   ;;  %v1510_v11 = vld [vmem:[#allocation6 + $0x2a0] ss:$16 sps:$4 sm:$0xff]  }
  0x2c   :  { %879 = vmatpush1.bf16.msra.mxu0 %v1503_v6  ;;  %v1511_v12 = vld [vmem:[#allocation6 + $0x84] ss:$16 sps:$4 sm:$0xff]   ;;  %v1515_v14 = vld [vmem:[#allocation6 + $0x80] ss:$16 sps:$4 sm:$0xff]   ;;  %v1595_v6 = vld [vmem:[#allocation6 + $0xe8] ss:$16 sps:$4 sm:$0xff]  }
  0x2d   :  { %932 = vmatpush1.bf16.msra.mxu1 %v1504_v7  ;;  %880 = vmatprep.subr.bf16.mxu0 %v1505_v8  ;;  %v1513_v13 = vld [vmem:[#allocation6 + $0x284] ss:$16 sps:$4 sm:$0xff]   ;;  %v1516_v15 = vld [vmem:[#allocation6 + $0x280] ss:$16 sps:$4 sm:$0xff]   ;;  %v1598_v7 = vld [vmem:[#allocation6 + $0x2e8] ss:$16 sps:$4 sm:$0xff]  }
  0x2e   :  { %933 = vmatprep.subr.bf16.mxu1 %v1507_v9  ;;  %v1517_v16 = vld [vmem:[#allocation6 + $0x64] ss:$16 sps:$4 sm:$0xff]   ;;  %v1521_v18 = vld [vmem:[#allocation6 + $0x60] ss:$16 sps:$4 sm:$0xff]   ;;  %v1603_v8 = vld [vmem:[#allocation6 + $0xcc] ss:$16 sps:$4 sm:$0xff]  }
  0x2f   :  { %v1519_v17 = vld [vmem:[#allocation6 + $0x264] ss:$16 sps:$4 sm:$0xff]   ;;  %v1522_v19 = vld [vmem:[#allocation6 + $0x260] ss:$16 sps:$4 sm:$0xff]   ;;  %v1606_v9 = vld [vmem:[#allocation6 + $0x2cc] ss:$16 sps:$4 sm:$0xff]  }
  0x30   :  { %881 = vmatpush1.bf16.msra.mxu0 %v1509_v10  ;;  %v1523_v20 = vld [vmem:[#allocation6 + $0x44] ss:$16 sps:$4 sm:$0xff]   ;;  %v1527_v22 = vld [vmem:[#allocation6 + $0x40] ss:$16 sps:$4 sm:$0xff]   ;;  %v1601_v10 = vld [vmem:[#allocation6 + $0xc8] ss:$16 sps:$4 sm:$0xff]  }
  0x31   :  { %934 = vmatpush1.bf16.msra.mxu1 %v1510_v11  ;;  %882 = vmatprep.subr.bf16.mxu0 %v1511_v12  ;;  %v1525_v21 = vld [vmem:[#allocation6 + $0x244] ss:$16 sps:$4 sm:$0xff]   ;;  %v1528_v23 = vld [vmem:[#allocation6 + $0x240] ss:$16 sps:$4 sm:$0xff]   ;;  %v1604_v11 = vld [vmem:[#allocation6 + $0x2c8] ss:$16 sps:$4 sm:$0xff]  }
  0x32   :  { %935 = vmatprep.subr.bf16.mxu1 %v1513_v13  ;;  %v1529_v24 = vld [vmem:[#allocation6 + $0x24] ss:$16 sps:$4 sm:$0xff]   ;;  %v1533_v26 = vld [vmem:[#allocation6 + $0x20] ss:$16 sps:$4 sm:$0xff]   ;;  %v1609_v12 = vld [vmem:[#allocation6 + $0xac] ss:$16 sps:$4 sm:$0xff]  }
  0x33   :  { %v1531_v25 = vld [vmem:[#allocation6 + $0x224] ss:$16 sps:$4 sm:$0xff]   ;;  %v1534_v27 = vld [vmem:[#allocation6 + $0x220] ss:$16 sps:$4 sm:$0xff]   ;;  %v1612_v13 = vld [vmem:[#allocation6 + $0x2ac] ss:$16 sps:$4 sm:$0xff]  }
  0x34   :  { %883 = vmatpush1.bf16.msra.mxu0 %v1515_v14  ;;  %v1535_v28 = vld [vmem:[#allocation6 + $0x4] ss:$16 sps:$4 sm:$0xff]   ;;  %v1539_v30 = vld [vmem:[#allocation6] ss:$16 sps:$4 sm:$0xff]   ;;  %v1607_v14 = vld [vmem:[#allocation6 + $0xa8] ss:$16 sps:$4 sm:$0xff]  }
  0x35   :  { %936 = vmatpush1.bf16.msra.mxu1 %v1516_v15  ;;  %884 = vmatprep.subr.bf16.mxu0 %v1517_v16  ;;  %v1537_v29 = vld [vmem:[#allocation6 + $0x204] ss:$16 sps:$4 sm:$0xff]   ;;  %v1540_v31 = vld [vmem:[#allocation6 + $0x200] ss:$16 sps:$4 sm:$0xff]   ;;  %v1610_v15 = vld [vmem:[#allocation6 + $0x2a8] ss:$16 sps:$4 sm:$0xff]  }
  0x36   :  { %937 = vmatprep.subr.bf16.mxu1 %v1519_v17  ;;  %v1541_v32 = vld [vmem:[#allocation6 + $0x1e4] ss:$16 sps:$4 sm:$0xff]   ;;  %v1545_v34 = vld [vmem:[#allocation6 + $0x1e0] ss:$16 sps:$4 sm:$0xff]   ;;  %v1615_v16 = vld [vmem:[#allocation6 + $0x8c] ss:$16 sps:$4 sm:$0xff]  }
  0x37   :  { %v1543_v33 = vld [vmem:[#allocation6 + $0x3e4] ss:$16 sps:$4 sm:$0xff]   ;;  %v1546_v35 = vld [vmem:[#allocation6 + $0x3e0] ss:$16 sps:$4 sm:$0xff]   ;;  %v1618_v17 = vld [vmem:[#allocation6 + $0x28c] ss:$16 sps:$4 sm:$0xff]  }
  0x38   :  { %885 = vmatpush1.bf16.msra.mxu0 %v1521_v18  ;;  %v1547_v36 = vld [vmem:[#allocation6 + $0x1c4] ss:$16 sps:$4 sm:$0xff]   ;;  %v1551_v38 = vld [vmem:[#allocation6 + $0x1c0] ss:$16 sps:$4 sm:$0xff]   ;;  %v1613_v18 = vld [vmem:[#allocation6 + $0x88] ss:$16 sps:$4 sm:$0xff]  }
  0x39   :  { %938 = vmatpush1.bf16.msra.mxu1 %v1522_v19  ;;  %886 = vmatprep.subr.bf16.mxu0 %v1523_v20  ;;  %v1549_v37 = vld [vmem:[#allocation6 + $0x3c4] ss:$16 sps:$4 sm:$0xff]   ;;  %v1552_v39 = vld [vmem:[#allocation6 + $0x3c0] ss:$16 sps:$4 sm:$0xff]   ;;  %v1616_v19 = vld [vmem:[#allocation6 + $0x288] ss:$16 sps:$4 sm:$0xff]  }
  0x3a   :  { %939 = vmatprep.subr.bf16.mxu1 %v1525_v21  ;;  %v1553_v40 = vld [vmem:[#allocation6 + $0x1a4] ss:$16 sps:$4 sm:$0xff]   ;;  %v1557_v42 = vld [vmem:[#allocation6 + $0x1a0] ss:$16 sps:$4 sm:$0xff]   ;;  %v1621_v20 = vld [vmem:[#allocation6 + $0x6c] ss:$16 sps:$4 sm:$0xff]  }
  0x3b   :  { %v1555_v41 = vld [vmem:[#allocation6 + $0x3a4] ss:$16 sps:$4 sm:$0xff]   ;;  %v1558_v43 = vld [vmem:[#allocation6 + $0x3a0] ss:$16 sps:$4 sm:$0xff]   ;;  %v1624_v21 = vld [vmem:[#allocation6 + $0x26c] ss:$16 sps:$4 sm:$0xff]  }
  0x3c   :  { %887 = vmatpush1.bf16.msra.mxu0 %v1527_v22  ;;  %v1559_v44 = vld [vmem:[#allocation6 + $0x184] ss:$16 sps:$4 sm:$0xff]   ;;  %v1563_v46 = vld [vmem:[#allocation6 + $0x180] ss:$16 sps:$4 sm:$0xff]   ;;  %v1619_v22 = vld [vmem:[#allocation6 + $0x68] ss:$16 sps:$4 sm:$0xff]  }
  0x3d   :  { %940 = vmatpush1.bf16.msra.mxu1 %v1528_v23  ;;  %888 = vmatprep.subr.bf16.mxu0 %v1529_v24  ;;  %v1561_v45 = vld [vmem:[#allocation6 + $0x384] ss:$16 sps:$4 sm:$0xff]   ;;  %v1564_v47 = vld [vmem:[#allocation6 + $0x380] ss:$16 sps:$4 sm:$0xff]   ;;  %v1622_v23 = vld [vmem:[#allocation6 + $0x268] ss:$16 sps:$4 sm:$0xff]  }
  0x3e   :  { %941 = vmatprep.subr.bf16.mxu1 %v1531_v25  ;;  %v1565_v48 = vld [vmem:[#allocation6 + $0x164] ss:$16 sps:$4 sm:$0xff]   ;;  %v1569_v52 = vld [vmem:[#allocation6 + $0x160] ss:$16 sps:$4 sm:$0xff]   ;;  %v1627_v24 = vld [vmem:[#allocation6 + $0x4c] ss:$16 sps:$4 sm:$0xff]  }
  0x3f   :  { %v1836_v49 = vld [vmem:[#allocation3 + $0x4] ss:$16 sps:$4 sm:$0xff]   ;;  %v1570_v53 = vld [vmem:[#allocation6 + $0x360] ss:$16 sps:$4 sm:$0xff]   ;;  %v1630_v25 = vld [vmem:[#allocation6 + $0x24c] ss:$16 sps:$4 sm:$0xff]  }
  0x40   :  { %889 = vmatpush1.bf16.msra.mxu0 %v1533_v26  ;;  %v1567_v50 = vld [vmem:[#allocation6 + $0x364] ss:$16 sps:$4 sm:$0xff]   ;;  %908 = vmatprep.mubr.bf16.mxu0 %v1836_v49  ;;  %v1575_v56 = vld [vmem:[#allocation6 + $0x140] ss:$16 sps:$4 sm:$0xff]  }
  0x41   :  { %942 = vmatpush1.bf16.msra.mxu1 %v1534_v27  ;;  %890 = vmatprep.subr.bf16.mxu0 %v1535_v28  ;;  %v1571_v54 = vld [vmem:[#allocation6 + $0x144] ss:$16 sps:$4 sm:$0xff]   ;;  %v1576_v57 = vld [vmem:[#allocation6 + $0x340] ss:$16 sps:$4 sm:$0xff]   ;;  %v1850_v27 = vld [vmem:[#allocation3 + $0x2c] ss:$16 sps:$4 sm:$0xff]  }
  0x42   :  { %943 = vmatprep.subr.bf16.mxu1 %v1537_v29  ;;  %v1573_v55 = vld [vmem:[#allocation6 + $0x344] ss:$16 sps:$4 sm:$0xff]   ;;  %v1581_v60 = vld [vmem:[#allocation6 + $0x120] ss:$16 sps:$4 sm:$0xff]   ;;  %v1855_v29 = vld [vmem:[#allocation3 + $0x28] ss:$16 sps:$4 sm:$0xff]  }
  0x43   :  { %v1577_v58 = vld [vmem:[#allocation6 + $0x124] ss:$16 sps:$4 sm:$0xff]   ;;  %v1582_v61 = vld [vmem:[#allocation6 + $0x320] ss:$16 sps:$4 sm:$0xff]  }
  0x44   :  { %891 = vmatpush1.bf16.msra.mxu0 %v1539_v30  ;;  %v1579_v59 = vld [vmem:[#allocation6 + $0x324] ss:$16 sps:$4 sm:$0xff]   ;;  %v1587_v0 = vld [vmem:[#allocation6 + $0x100] ss:$16 sps:$4 sm:$0xff]   ;;  %v1625_v30 = vld [vmem:[#allocation6 + $0x48] ss:$16 sps:$4 sm:$0xff]  }
  0x45   :  { %944 = vmatpush1.bf16.msra.mxu1 %v1540_v31  ;;  %892 = vmatprep.subr.bf16.mxu0 %v1541_v32  ;;  %v1583_v62 = vld [vmem:[#allocation6 + $0x104] ss:$16 sps:$4 sm:$0xff]   ;;  %v1588_v1 = vld [vmem:[#allocation6 + $0x300] ss:$16 sps:$4 sm:$0xff]   ;;  %v1628_v31 = vld [vmem:[#allocation6 + $0x248] ss:$16 sps:$4 sm:$0xff]  }
  0x46   :  { %945 = vmatprep.subr.bf16.mxu1 %v1543_v33  ;;  %v1585_v63 = vld [vmem:[#allocation6 + $0x304] ss:$16 sps:$4 sm:$0xff]   ;;  %v1842_v4 = vld [vmem:[#allocation3] ss:$16 sps:$4 sm:$0xff]   ;;  %v1633_v32 = vld [vmem:[#allocation6 + $0x2c] ss:$16 sps:$4 sm:$0xff]  }
  0x47   :  { %v1848_v26 = vld [vmem:[#allocation3 + $0x24] ss:$16 sps:$4 sm:$0xff]   ;;  %v1853_v28 = vld [vmem:[#allocation3 + $0x20] ss:$16 sps:$4 sm:$0xff]   ;;  %v1636_v33 = vld [vmem:[#allocation6 + $0x22c] ss:$16 sps:$4 sm:$0xff]  }
  0x48   :  { %893 = vmatpush2.bf16.msra.mxu0 %v1545_v34  ;;  %v1631_v34 = vld [vmem:[#allocation6 + $0x28] ss:$16 sps:$4 sm:$0xff]  }
  0x49   :  { %946 = vmatpush2.bf16.msra.mxu1 %v1546_v35  ;;  %894 = vmatprep.subr.bf16.mxu0 %v1547_v36  ;;  %v1634_v35 = vld [vmem:[#allocation6 + $0x228] ss:$16 sps:$4 sm:$0xff]   ;;  %v1639_v36 = vld [vmem:[#allocation6 + $0xc] ss:$16 sps:$4 sm:$0xff]  }
  0x4a   :  { %947 = vmatprep.subr.bf16.mxu1 %v1549_v37  ;;  %v1642_v37 = vld [vmem:[#allocation6 + $0x20c] ss:$16 sps:$4 sm:$0xff]  }
  0x4c   :  { %895 = vmatpush2.bf16.msra.mxu0 %v1551_v38  ;;  %v1637_v38 = vld [vmem:[#allocation6 + $0x8] ss:$16 sps:$4 sm:$0xff]  }
  0x4d   :  { %948 = vmatpush2.bf16.msra.mxu1 %v1552_v39  ;;  %896 = vmatprep.subr.bf16.mxu0 %v1553_v40  ;;  %v1640_v39 = vld [vmem:[#allocation6 + $0x208] ss:$16 sps:$4 sm:$0xff]   ;;  %v1645_v40 = vld [vmem:[#allocation6 + $0x1ec] ss:$16 sps:$4 sm:$0xff]  }
  0x4e   :  { %949 = vmatprep.subr.bf16.mxu1 %v1555_v41  ;;  %v1648_v41 = vld [vmem:[#allocation6 + $0x3ec] ss:$16 sps:$4 sm:$0xff]  }
  0x50   :  { %897 = vmatpush2.bf16.msra.mxu0 %v1557_v42  ;;  %v1643_v42 = vld [vmem:[#allocation6 + $0x1e8] ss:$16 sps:$4 sm:$0xff]  }
  0x51   :  { %950 = vmatpush2.bf16.msra.mxu1 %v1558_v43  ;;  %898 = vmatprep.subr.bf16.mxu0 %v1559_v44  ;;  %v1646_v43 = vld [vmem:[#allocation6 + $0x3e8] ss:$16 sps:$4 sm:$0xff]   ;;  %v1651_v44 = vld [vmem:[#allocation6 + $0x1cc] ss:$16 sps:$4 sm:$0xff]  }
  0x52   :  { %951 = vmatprep.subr.bf16.mxu1 %v1561_v45  ;;  %v1654_v45 = vld [vmem:[#allocation6 + $0x3cc] ss:$16 sps:$4 sm:$0xff]  }
  0x54   :  { %899 = vmatpush2.bf16.msra.mxu0 %v1563_v46  ;;  %v1649_v46 = vld [vmem:[#allocation6 + $0x1c8] ss:$16 sps:$4 sm:$0xff]  }
  0x55   :  { %952 = vmatpush2.bf16.msra.mxu1 %v1564_v47  ;;  %900 = vmatprep.subr.bf16.mxu0 %v1565_v48  ;;  %v1652_v47 = vld [vmem:[#allocation6 + $0x3c8] ss:$16 sps:$4 sm:$0xff]   ;;  %v1657_v48 = vld [vmem:[#allocation6 + $0x1ac] ss:$16 sps:$4 sm:$0xff]  }
  0x56   :  { %953 = vmatprep.subr.bf16.mxu1 %v1567_v50  ;;  %v1655_v50 = vld [vmem:[#allocation6 + $0x1a8] ss:$16 sps:$4 sm:$0xff]  }
  0x58   :  { %901 = vmatpush2.bf16.msra.mxu0 %v1569_v52  ;;  %v1663_v52 = vld [vmem:[#allocation6 + $0x18c] ss:$16 sps:$4 sm:$0xff]  }
  0x59   :  { %954 = vmatpush2.bf16.msra.mxu1 %v1570_v53  ;;  %902 = vmatprep.subr.bf16.mxu0 %v1571_v54  ;;  %v1666_v53 = vld [vmem:[#allocation6 + $0x38c] ss:$16 sps:$4 sm:$0xff]   ;;  %v1661_v54 = vld [vmem:[#allocation6 + $0x188] ss:$16 sps:$4 sm:$0xff]  }
  0x5a   :  { %955 = vmatprep.subr.bf16.mxu1 %v1573_v55  ;;  %v1664_v55 = vld [vmem:[#allocation6 + $0x388] ss:$16 sps:$4 sm:$0xff]  }
  0x5c   :  { %903 = vmatpush2.bf16.msra.mxu0 %v1575_v56  ;;  %v1669_v56 = vld [vmem:[#allocation6 + $0x16c] ss:$16 sps:$4 sm:$0xff]  }
  0x5d   :  { %956 = vmatpush2.bf16.msra.mxu1 %v1576_v57  ;;  %904 = vmatprep.subr.bf16.mxu0 %v1577_v58  ;;  %v1672_v57 = vld [vmem:[#allocation6 + $0x36c] ss:$16 sps:$4 sm:$0xff]   ;;  %v1667_v58 = vld [vmem:[#allocation6 + $0x168] ss:$16 sps:$4 sm:$0xff]  }
  0x5e   :  { %957 = vmatprep.subr.bf16.mxu1 %v1579_v59  ;;  %v1670_v59 = vld [vmem:[#allocation6 + $0x368] ss:$16 sps:$4 sm:$0xff]  }
  0x60   :  { %905 = vmatpush2.bf16.msra.mxu0 %v1581_v60  ;;  %v1681_v60 = vld [vmem:[#allocation6 + $0x14c] ss:$16 sps:$4 sm:$0xff]  }
  0x61   :  { %958 = vmatpush2.bf16.msra.mxu1 %v1582_v61  ;;  %906 = vmatprep.subr.bf16.mxu0 %v1583_v62  ;;  %v1684_v61 = vld [vmem:[#allocation6 + $0x34c] ss:$16 sps:$4 sm:$0xff]   ;;  %v1679_v62 = vld [vmem:[#allocation6 + $0x148] ss:$16 sps:$4 sm:$0xff]  }
  0x62   :  { %959 = vmatprep.subr.bf16.mxu1 %v1585_v63  ;;  %v1682_v63 = vld [vmem:[#allocation6 + $0x348] ss:$16 sps:$4 sm:$0xff]  }
  0x64   :  { %907 = vmatpush2.bf16.msra.mxu0 %v1587_v0  ;;  %v1687_v0 = vld [vmem:[#allocation6 + $0x12c] ss:$16 sps:$4 sm:$0xff]  }
  0x65   :  { %960 = vmatpush2.bf16.msra.mxu1 %v1588_v1  ;;  %982 = vmatprep.subr.bf16.mxu0 %v1597_v2  ;;  %v1690_v1 = vld [vmem:[#allocation6 + $0x32c] ss:$16 sps:$4 sm:$0xff]   ;;  %v1685_v2 = vld [vmem:[#allocation6 + $0x128] ss:$16 sps:$4 sm:$0xff]  }
  0x66   :  { %1035 = vmatprep.subr.bf16.mxu1 %v1600_v3  ;;  %v1688_v3 = vld [vmem:[#allocation6 + $0x328] ss:$16 sps:$4 sm:$0xff]  }
  0x67   :  { %909 = vmatmul.mubr.bf16.vlgmr.msra.gmra.mxu0 %v1842_v4 }
  0x68   :  { %962 = vmatmul.mubr.bf16.vlgmr.msra.gmra.mxu1 %v1844_v5  ;;  %983 = vmatpush1.bf16.msra.mxu0 %v1595_v6  ;;  %v1693_v6 = vld [vmem:[#allocation6 + $0x10c] ss:$16 sps:$4 sm:$0xff]  }
  0x69   :  { %1036 = vmatpush1.bf16.msra.mxu1 %v1598_v7  ;;  %984 = vmatprep.subr.bf16.mxu0 %v1603_v8  ;;  %v1696_v7 = vld [vmem:[#allocation6 + $0x30c] ss:$16 sps:$4 sm:$0xff]   ;;  %v1691_v8 = vld [vmem:[#allocation6 + $0x108] ss:$16 sps:$4 sm:$0xff]  }
  0x6a   :  { %1037 = vmatprep.subr.bf16.mxu1 %v1606_v9  ;;  %918 = vmatprep.mubr.bf16.mxu0 %v1848_v26  ;;  %v1694_v9 = vld [vmem:[#allocation6 + $0x308] ss:$16 sps:$4 sm:$0xff]  }
  0x6b   :  { %971 = vmatprep.mubr.bf16.mxu1 %v1850_v27 }
  0x6c   :  { %985 = vmatpush1.bf16.msra.mxu0 %v1601_v10  ;;  %v1153_v10 = vld [vmem:[#allocation8 + $0xf8] sm:$0xff] }
  0x6d   :  { %1038 = vmatpush1.bf16.msra.mxu1 %v1604_v11  ;;  %986 = vmatprep.subr.bf16.mxu0 %v1609_v12  ;;  %v1137_v11 = vld [vmem:[#allocation8 + $0x78] sm:$0xff]  ;;  %v1152_v12 = vld [vmem:[#allocation8 + $0xf0] sm:$0xff] }
  0x6e   :  { %1039 = vmatprep.subr.bf16.mxu1 %v1612_v13  ;;  %v1136_v13 = vld [vmem:[#allocation8 + $0x70] sm:$0xff] }
  0x6f   :  { %919 = vmatmul.mubr.bf16.gmra.mxu0 %v1853_v28 }
  0x70   :  { %987 = vmatpush1.bf16.msra.mxu0 %v1607_v14  ;;  %972 = vmatmul.mubr.bf16.gmra.mxu1 %v1855_v29  ;;  %v1151_v14 = vld [vmem:[#allocation8 + $0xe8] sm:$0xff] }
  0x71   :  { %1040 = vmatpush1.bf16.msra.mxu1 %v1610_v15  ;;  %988 = vmatprep.subr.bf16.mxu0 %v1615_v16  ;;  %v1134_v15 = vld [vmem:[#allocation8 + $0x60] sm:$0xff]  ;;  %v1149_v16 = vld [vmem:[#allocation8 + $0xd8] sm:$0xff] }
  0x72   :  { %1041 = vmatprep.subr.bf16.mxu1 %v1618_v17  ;;  %1014 = vmatprep.mubr.bf16.mxu0 %v1836_v49  ;;  %v1660_v49 = vld [vmem:[#allocation6 + $0x3ac] ss:$16 sps:$4 sm:$0xff]  }
  0x73   :  { %1067 = vmatprep.mubr.bf16.mxu1 %v1838_v51  ;;  %v1658_v51 = vld [vmem:[#allocation6 + $0x3a8] ss:$16 sps:$4 sm:$0xff]  }
  0x74   :  { %989 = vmatpush1.bf16.msra.mxu0 %v1613_v18  ;;  %v1133_v17 = vld [vmem:[#allocation8 + $0x58] sm:$0xff]  ;;  %v1148_v18 = vld [vmem:[#allocation8 + $0xd0] sm:$0xff] }
  0x75   :  { %1042 = vmatpush1.bf16.msra.mxu1 %v1616_v19  ;;  %990 = vmatprep.subr.bf16.mxu0 %v1621_v20  ;;  %v1132_v19 = vld [vmem:[#allocation8 + $0x50] sm:$0xff]  ;;  %v1147_v20 = vld [vmem:[#allocation8 + $0xc8] sm:$0xff] }
  0x76   :  { %1043 = vmatprep.subr.bf16.mxu1 %v1624_v21  ;;  %v1131_v21 = vld [vmem:[#allocation8 + $0x48] sm:$0xff] }
  0x78   :  { %991 = vmatpush1.bf16.msra.mxu0 %v1619_v22  ;;  %v1146_v22 = vld [vmem:[#allocation8 + $0xc0] sm:$0xff] }
  0x79   :  { %1044 = vmatpush1.bf16.msra.mxu1 %v1622_v23  ;;  %992 = vmatprep.subr.bf16.mxu0 %v1627_v24  ;;  %v1130_v23 = vld [vmem:[#allocation8 + $0x40] sm:$0xff]  ;;  %v1145_v24 = vld [vmem:[#allocation8 + $0xb8] sm:$0xff] }
  0x7a   :  { %1045 = vmatprep.subr.bf16.mxu1 %v1630_v25  ;;  %v1129_v25 = vld [vmem:[#allocation8 + $0x38] sm:$0xff] }
  0x7c   :  { %993 = vmatpush1.bf16.msra.mxu0 %v1625_v30  ;;  %v1142_v30 = vld [vmem:[#allocation8 + $0xa0] sm:$0xff] }
  0x7d   :  { %1046 = vmatpush1.bf16.msra.mxu1 %v1628_v31  ;;  %994 = vmatprep.subr.bf16.mxu0 %v1633_v32  ;;  %v1126_v31 = vld [vmem:[#allocation8 + $0x20] sm:$0xff]  ;;  %v1141_v32 = vld [vmem:[#allocation8 + $0x98] sm:$0xff] }
  0x7e   :  { %1047 = vmatprep.subr.bf16.mxu1 %v1636_v33  ;;  %v1125_v33 = vld [vmem:[#allocation8 + $0x18] sm:$0xff] }
  0x80   :  { %995 = vmatpush1.bf16.msra.mxu0 %v1631_v34  ;;  %v1140_v34 = vld [vmem:[#allocation8 + $0x90] sm:$0xff] }
  0x81   :  { %1048 = vmatpush1.bf16.msra.mxu1 %v1634_v35  ;;  %996 = vmatprep.subr.bf16.mxu0 %v1639_v36  ;;  %v1124_v35 = vld [vmem:[#allocation8 + $0x10] sm:$0xff]  ;;  %v1139_v36 = vld [vmem:[#allocation8 + $0x88] sm:$0xff] }
  0x82   :  { %1049 = vmatprep.subr.bf16.mxu1 %v1642_v37  ;;  %v1123_v37 = vld [vmem:[#allocation8 + $0x8] sm:$0xff] }
  0x84   :  { %997 = vmatpush1.bf16.msra.mxu0 %v1637_v38  ;;  %v1138_v38 = vld [vmem:[#allocation8 + $0x80] sm:$0xff] }
  0x85   :  { %1050 = vmatpush1.bf16.msra.mxu1 %v1640_v39  ;;  %998 = vmatprep.subr.bf16.mxu0 %v1645_v40  ;;  %v1122_v39 = vld [vmem:[#allocation8] sm:$0xff] }
  0x86   :  { %1051 = vmatprep.subr.bf16.mxu1 %v1648_v41 }
  0x88   :  { %999 = vmatpush2.bf16.msra.mxu0 %v1643_v42 }
  0x89   :  { %1052 = vmatpush2.bf16.msra.mxu1 %v1646_v43  ;;  %1000 = vmatprep.subr.bf16.mxu0 %v1651_v44 }
  0x8a   :  { %1053 = vmatprep.subr.bf16.mxu1 %v1654_v45 }
  0x8c   :  { %1001 = vmatpush2.bf16.msra.mxu0 %v1649_v46 }
  0x8d   :  { %1054 = vmatpush2.bf16.msra.mxu1 %v1652_v47  ;;  %1002 = vmatprep.subr.bf16.mxu0 %v1657_v48 }
  0x8e   :  { %1055 = vmatprep.subr.bf16.mxu1 %v1660_v49 }
  0x90   :  { %1003 = vmatpush2.bf16.msra.mxu0 %v1655_v50 }
  0x91   :  { %1056 = vmatpush2.bf16.msra.mxu1 %v1658_v51  ;;  %1004 = vmatprep.subr.bf16.mxu0 %v1663_v52 }
  0x92   :  { %1057 = vmatprep.subr.bf16.mxu1 %v1666_v53 }
  0x94   :  { %1005 = vmatpush2.bf16.msra.mxu0 %v1661_v54 }
  0x95   :  { %1058 = vmatpush2.bf16.msra.mxu1 %v1664_v55  ;;  %1006 = vmatprep.subr.bf16.mxu0 %v1669_v56 }
  0x96   :  { %1059 = vmatprep.subr.bf16.mxu1 %v1672_v57 }
  0x98   :  { %1007 = vmatpush2.bf16.msra.mxu0 %v1667_v58 }
  0x99   :  { %1060 = vmatpush2.bf16.msra.mxu1 %v1670_v59  ;;  %1008 = vmatprep.subr.bf16.mxu0 %v1681_v60 }
  0x9a   :  { %1061 = vmatprep.subr.bf16.mxu1 %v1684_v61 }
  0x9c   :  { %1009 = vmatpush2.bf16.msra.mxu0 %v1679_v62 }
  0x9d   :  { %1062 = vmatpush2.bf16.msra.mxu1 %v1682_v63  ;;  %1010 = vmatprep.subr.bf16.mxu0 %v1687_v0 }
  0x9e   :  { %1063 = vmatprep.subr.bf16.mxu1 %v1690_v1 }
  0xa0   :  { %1011 = vmatpush2.bf16.msra.mxu0 %v1685_v2 }
  0xa1   :  { %1064 = vmatpush2.bf16.msra.mxu1 %v1688_v3  ;;  %1012 = vmatprep.subr.bf16.mxu0 %v1693_v6 }
  0xa2   :  { %1065 = vmatprep.subr.bf16.mxu1 %v1696_v7 }
  0xa4   :  { %1013 = vmatpush2.bf16.msra.mxu0 %v1691_v8 }
  0xa5   :  { %1066 = vmatpush2.bf16.msra.mxu1 %v1694_v9  ;;  %1409 = vmatprep.subr.mxu0 %v1153_v10 }
  0xa6   :  { %1453 = vmatprep.subr.mxu1 %v1153_v10 }
  0xa7   :  { %1015 = vmatmul.mubr.bf16.vlgmr.msra.gmra.mxu0 %v1842_v4  ;;  %v1135_v4 = vld [vmem:[#allocation8 + $0x68] sm:$0xff] }
  0xa8   :  { %1068 = vmatmul.mubr.bf16.vlgmr.msra.gmra.mxu1 %v1844_v5  ;;  %1024 = vmatprep.mubr.bf16.mxu0 %v1848_v26  ;;  %v1150_v5 = vld [vmem:[#allocation8 + $0xe0] sm:$0xff]  ;;  %v1144_v26 = vld [vmem:[#allocation8 + $0xb0] sm:$0xff] }
  0xa9   :  { %1077 = vmatprep.mubr.bf16.mxu1 %v1850_v27  ;;  %1410 = vmatpush3.msra.mxu0 %v1137_v11  ;;  %v1128_v27 = vld [vmem:[#allocation8 + $0x30] sm:$0xff] }
  0xaa   :  { %1469 = vmatpush3.msra.mxu1 %v1137_v11  ;;  %1411 = vmatprep.subr.mxu0 %v1152_v12 }
  0xab   :  { %1454 = vmatprep.subr.mxu1 %v1152_v12  ;;  %1412 = vmatpush3.msra.mxu0 %v1136_v13 }
  0xac   :  { %1470 = vmatpush3.msra.mxu1 %v1136_v13  ;;  %1413 = vmatprep.subr.mxu0 %v1151_v14 }
  0xad   :  { %1455 = vmatprep.subr.mxu1 %v1151_v14  ;;  %1414 = vmatpush3.msra.mxu0 %v1135_v4  ;;  %v1113_v14 = vstv %s1877_s0  ;;  %s1798_s0 = smov [#allocation9]  }
  0xae   :  { %1471 = vmatpush3.msra.mxu1 %v1135_v4  ;;  %1415 = vmatprep.subr.mxu0 %v1150_v5  ;;  %s1260_s7 = sshll.u32 %s1798_s0, 4  ;;  %s1261_s7 = int_to_ptr.vmem [resolvable:$true] %s1260_s7 }
  0xaf   :  { %1025 = vmatmul.mubr.bf16.gmra.mxu0 %v1853_v28  ;;  %1456 = vmatprep.subr.mxu1 %v1150_v5  ;;  %v1143_v28 = vld [vmem:[#allocation8 + $0xa8] sm:$0xff]  ;;  %s1765_s8 = scalar_lea.vmem %s1261_s7, 512  ;;  %p1770_p2 = scmp.lt.s32.totalorder %s1261_s7, %s1261_s7 }
  0xb0   :  { %1078 = vmatmul.mubr.bf16.gmra.mxu1 %v1855_v29  ;;  %1416 = vmatpush3.msra.mxu0 %v1134_v15  ;;  %v1127_v29 = vld [vmem:[#allocation8 + $0x28] sm:$0xff]  ;;  %p1766_p1 = scmp.ne.s32.totalorder %s1261_s7, %s1765_s8  ;;  %p1771_p3 = scmp.lt.s32.totalorder %s1765_s8, %s1765_s8 }
  0xb1   :  { %1472 = vmatpush3.msra.mxu1 %v1134_v15  ;;  %1417 = vmatprep.subr.mxu0 %v1149_v16 }
  0xb2   :  { %1457 = vmatprep.subr.mxu1 %v1149_v16  ;;  %1418 = vmatpush3.msra.mxu0 %v1133_v17  ;;  %p1772_p4 = por %p1771_p3, %p1770_p2 }
  0xb3   :  { %1473 = vmatpush3.msra.mxu1 %v1133_v17  ;;  %1419 = vmatprep.subr.mxu0 %v1148_v18 }
  0xb4   :  { %1458 = vmatprep.subr.mxu1 %v1148_v18  ;;  %1420 = vmatpush3.msra.mxu0 %v1132_v19  ;;  %p1773_p5 = pnand %p1772_p4, %p1766_p1 }
  0xb5   :  { %1474 = vmatpush3.msra.mxu1 %v1132_v19  ;;  %1421 = vmatprep.subr.mxu0 %v1147_v20 }
  0xb6   :  { %1459 = vmatprep.subr.mxu1 %v1147_v20  ;;  %1422 = vmatpush3.msra.mxu0 %v1131_v21 }
  0xb7   :  { %1475 = vmatpush3.msra.mxu1 %v1131_v21  ;;  %1423 = vmatprep.subr.mxu0 %v1146_v22 }
  0xb8   :  { %1460 = vmatprep.subr.mxu1 %v1146_v22  ;;  %1424 = vmatpush3.msra.mxu0 %v1130_v23 }
  0xb9   :  { %1476 = vmatpush3.msra.mxu1 %v1130_v23  ;;  %1425 = vmatprep.subr.mxu0 %v1145_v24 }
  0xba   :  { %1461 = vmatprep.subr.mxu1 %v1145_v24  ;;  %1426 = vmatpush3.msra.mxu0 %v1129_v25 }
  0xbb   :  { %1477 = vmatpush3.msra.mxu1 %v1129_v25  ;;  %1427 = vmatprep.subr.mxu0 %v1144_v26 }
  0xbc   :  { %1462 = vmatprep.subr.mxu1 %v1144_v26  ;;  %1428 = vmatpush3.msra.mxu0 %v1128_v27 }
  0xbd   :  { %1478 = vmatpush3.msra.mxu1 %v1128_v27  ;;  %1429 = vmatprep.subr.mxu0 %v1143_v28 }
  0xbe   :  { %1463 = vmatprep.subr.mxu1 %v1143_v28  ;;  %1430 = vmatpush3.msra.mxu0 %v1127_v29 }
  0xbf   :  { %1479 = vmatpush3.msra.mxu1 %v1127_v29  ;;  %1431 = vmatprep.subr.mxu0 %v1142_v30 }
  0xc0   :  { %1464 = vmatprep.subr.mxu1 %v1142_v30  ;;  %1432 = vmatpush3.msra.mxu0 %v1126_v31 }
  0xc1   :  { %1480 = vmatpush3.msra.mxu1 %v1126_v31  ;;  %1433 = vmatprep.subr.mxu0 %v1141_v32 }
  0xc2   :  { %1465 = vmatprep.subr.mxu1 %v1141_v32  ;;  %1434 = vmatpush3.msra.mxu0 %v1125_v33 }
  0xc3   :  { %1481 = vmatpush3.msra.mxu1 %v1125_v33  ;;  %1435 = vmatprep.subr.mxu0 %v1140_v34 }
  0xc4   :  { %1466 = vmatprep.subr.mxu1 %v1140_v34  ;;  %1436 = vmatpush3.msra.mxu0 %v1124_v35 }
  0xc5   :  { %1482 = vmatpush3.msra.mxu1 %v1124_v35  ;;  %1437 = vmatprep.subr.mxu0 %v1139_v36 }
  0xc6   :  { %1467 = vmatprep.subr.mxu1 %v1139_v36  ;;  %1438 = vmatpush3.msra.mxu0 %v1123_v37 }
  0xc7   :  { %1483 = vmatpush3.msra.mxu1 %v1123_v37  ;;  %1439 = vmatprep.subr.mxu0 %v1138_v38 }
  0xc8   :  { %1468 = vmatprep.subr.mxu1 %v1138_v38  ;;  %1440 = vmatpush3.msra.mxu0 %v1122_v39 }
  0xc9   :  { %1484 = vmatpush3.msra.mxu1 %v1122_v39 }
 0x127   :  { %v910_v40 = vpop.f32.mrf.mxu0 }
 0x128   :  { %v963_v41 = vpop.f32.mrf.mxu1 }
 0x129   :  { %v912_v42 = vpop.f32.mrf.mxu0  ;;  %v964_v56 = vadd.f32 %v963_v41, %v910_v40 }
 0x12a   :  { %v965_v43 = vpop.f32.mrf.mxu1 }
 0x12b   :  { %v914_v44 = vpop.f32.mrf.mxu0  ;;  %v966_v59 = vadd.f32 %v965_v43, %v912_v42  ;;  %v1088_v1 = vmul.f32 %v964_v56, %v964_v56 }
 0x12c   :  { %v967_v45 = vpop.f32.mrf.mxu1 }
 0x12d   :  { %v916_v46 = vpop.f32.mrf.mxu0  ;;  %v968_v2 = vadd.f32 %v967_v45, %v914_v44  ;;  %v1089_v7 = vmul.f32 %v966_v59, %v966_v59 }
 0x12e   :  { %v969_v47 = vpop.f32.mrf.mxu1 }
 0x12f   :  { %v920_v48 = vpop.f32.mrf.mxu0  ;;  %v970_v8 = vadd.f32 %v969_v47, %v916_v46  ;;  %v1090_v16 = vmul.f32 %v968_v2, %v968_v2 }
 0x130   :  { %v973_v49 = vpop.f32.mrf.mxu1 }
 0x131   :  { %v922_v50 = vpop.f32.mrf.mxu0  ;;  %v974_v17 = vadd.f32 %v973_v49, %v920_v48  ;;  %v1091_v21 = vmul.f32 %v970_v8, %v970_v8 }
 0x132   :  { %v975_v51 = vpop.f32.mrf.mxu1 }
 0x133   :  { %v924_v52 = vpop.f32.mrf.mxu0  ;;  %v976_v18 = vadd.f32 %v975_v51, %v922_v50  ;;  %v1092_v32 = vmul.f32 %v974_v17, %v974_v17 }
 0x134   :  { %v977_v53 = vpop.f32.mrf.mxu1 }
 0x135   :  { %v926_v54 = vpop.f32.mrf.mxu0  ;;  %v1093_v33 = vmul.f32 %v976_v18, %v976_v18  ;;  %v978_v34 = vadd.f32 %v977_v53, %v924_v52 }
 0x136   :  { %v979_v55 = vpop.f32.mrf.mxu1 }
 0x137   :  { %v980_v37 = vadd.f32 %v979_v55, %v926_v54  ;;  %v1094_v48 = vmul.f32 %v978_v34, %v978_v34 }
 0x139   :  { %v1095_v49 = vmul.f32 %v980_v37, %v980_v37 }
 0x167   :  { %v1016_v57 = vpop.f32.mrf.mxu0 }
 0x168   :  { %v1069_v58 = vpop.f32.mrf.mxu1 }
 0x169   :  { %v1070_v60 = vadd.f32 %v1069_v58, %v1016_v57  ;;  %v1018_v61 = vpop.f32.mrf.mxu0 }
 0x16a   :  { %v1071_v62 = vpop.f32.mrf.mxu1 }
 0x16b   :  { %v1096_v63 = vmul.f32 %v1070_v60, %v1070_v60  ;;  %v1072_v0 = vadd.f32 %v1071_v62, %v1018_v61  ;;  %v1020_v3 = vpop.f32.mrf.mxu0 }
 0x16c   :  { %v1073_v6 = vpop.f32.mrf.mxu1 }
 0x16d   :  { %v1097_v9 = vmul.f32 %v1072_v0, %v1072_v0  ;;  %v1074_v10 = vadd.f32 %v1073_v6, %v1020_v3  ;;  %v1104_v11 = vadd.f32 %v1096_v63, %v1088_v1  ;;  %v1022_v12 = vpop.f32.mrf.mxu0 }
 0x16e   :  { %v1075_v13 = vpop.f32.mrf.mxu1 }
 0x16f   :  { %v1105_v4 = vadd.f32 %v1097_v9, %v1089_v7  ;;  %v1098_v5 = vmul.f32 %v1074_v10, %v1074_v10  ;;  %v1076_v15 = vadd.f32 %v1075_v13, %v1022_v12  ;;  %v1026_v19 = vpop.f32.mrf.mxu0  ;;  %v1114_v25 = vmul.f32 %v1113_v14, %v1104_v11 }
 0x170   :  { %v1079_v20 = vpop.f32.mrf.mxu1 }
 0x171   :  { %v1099_v22 = vmul.f32 %v1076_v15, %v1076_v15  ;;  %v1080_v23 = vadd.f32 %v1079_v20, %v1026_v19  ;;  %v1115_v24 = vmul.f32 %v1113_v14, %v1105_v4  ;;  %v1106_v26 = vadd.f32 %v1098_v5, %v1090_v16  ;;  %v1028_v27 = vpop.f32.mrf.mxu0 }
 0x172   :  { %v1081_v28 = vpop.f32.mrf.mxu1 }
 0x173   :  { %v1107_v29 = vadd.f32 %v1099_v22, %v1091_v21  ;;  %v1100_v30 = vmul.f32 %v1080_v23, %v1080_v23  ;;  %v1082_v31 = vadd.f32 %v1081_v28, %v1028_v27  ;;  %1218 = vmatprep.mubr.f32.mxu0 %v1115_v24  ;;  %v1030_v35 = vpop.f32.mrf.mxu0  ;;  %v1116_v44 = vmul.f32 %v1113_v14, %v1106_v26 }
 0x174   :  { %v1083_v36 = vpop.f32.mrf.mxu1  ;;  %1219 = vmatmul.mubr.f32.vlgmr.msra.gmra.mxu0 %v1114_v25 }
 0x175   :  { %v1101_v38 = vmul.f32 %v1082_v31, %v1082_v31  ;;  %v1084_v39 = vadd.f32 %v1083_v36, %v1030_v35  ;;  %v1117_v40 = vmul.f32 %v1113_v14, %v1107_v29  ;;  %v1108_v41 = vadd.f32 %v1100_v30, %v1092_v32  ;;  %v1032_v42 = vpop.f32.mrf.mxu0 }
 0x176   :  { %v1085_v43 = vpop.f32.mrf.mxu1 }
 0x177   :  { %v1109_v45 = vadd.f32 %v1101_v38, %v1093_v33  ;;  %v1102_v46 = vmul.f32 %v1084_v39, %v1084_v39  ;;  %v1086_v47 = vadd.f32 %v1085_v43, %v1032_v42  ;;  %1223 = vmatprep.mubr.f32.mxu0 %v1117_v40  ;;  %v1118_v52 = vmul.f32 %v1113_v14, %v1108_v41 }
 0x178   :  { %1224 = vmatmul.mubr.f32.gmra.mxu0 %v1116_v44 }
 0x179   :  { %v1103_v50 = vmul.f32 %v1086_v47, %v1086_v47  ;;  %v1119_v51 = vmul.f32 %v1113_v14, %v1109_v45  ;;  %v1110_v53 = vadd.f32 %v1102_v46, %v1094_v48 }
 0x17b   :  { %v1111_v56 = vadd.f32 %v1103_v50, %v1095_v49  ;;  %1228 = vmatprep.mubr.f32.mxu1 %v1119_v51  ;;  %v1120_v55 = vmul.f32 %v1113_v14, %v1110_v53 }
 0x17c   :  { %1229 = vmatmul.mubr.f32.vlgmr.msra.gmra.mxu1 %v1118_v52 }
 0x17d   :  { %v1121_v54 = vmul.f32 %v1113_v14, %v1111_v56 }
 0x17f   :  { %1233 = vmatprep.mubr.f32.mxu1 %v1121_v54 }
 0x180   :  { %1234 = vmatmul.mubr.f32.gmra.mxu1 %v1120_v55 }
 0x234   :  { %v1441_v57 = vpop.f32.mrf.mxu0 }
 0x236   :  { %v1442_v58 = vpop.f32.mrf.mxu0 }
 0x237   :  { %v1443_v59 = vadd.f32 %v1442_v58, %v1441_v57 }
 0x238   :  { %v1444_v60 = vpop.f32.mrf.mxu0 }
 0x239   :  { %v1239_v61 = vmax.f32 %v1443_v59, 1e-09 }
 0x23a   :  { %v1445_v62 = vpop.f32.mrf.mxu0 }
 0x23b   :  { %1697 = vlog2.f32 %v1239_v61  ;;  %v1446_v63 = vadd.f32 %v1445_v62, %v1444_v60 }
 0x23c   :  { %v1447_v0 = vpop.f32.mrf.mxu1 }
 0x23d   :  { %v1240_v1 = vmax.f32 %v1446_v63, 1e-09 }
 0x23e   :  { %v1448_v2 = vpop.f32.mrf.mxu1 }
 0x23f   :  { %1699 = vlog2.f32 %v1240_v1  ;;  %v1449_v3 = vadd.f32 %v1448_v2, %v1447_v0 }
 0x240   :  { %v1450_v6 = vpop.f32.mrf.mxu1 }
 0x241   :  { %v1241_v7 = vmax.f32 %v1449_v3, 1e-09 }
 0x242   :  { %v1451_v8 = vpop.f32.mrf.mxu1 }
 0x243   :  { %1701 = vlog2.f32 %v1241_v7  ;;  %v1452_v9 = vadd.f32 %v1451_v8, %v1450_v6 }
 0x245   :  { %v1242_v10 = vmax.f32 %v1452_v9, 1e-09 }
 0x247   :  { %1703 = vlog2.f32 %v1242_v10 }
 0x248   :  { %v1698_v11 = vpop.eup %1697 }
 0x249   :  { %v1244_v12 = vmul.f32 0.6931472, %v1698_v11 }
 0x24b   :  { %1251 = vst [vmem:[#allocation9] sm:$0xff] %v1244_v12 }
 0x24c   :  { %v1700_v13 = vpop.eup %1699 }
 0x24d   :  { %v1246_v14 = vmul.f32 0.6931472, %v1700_v13 }
 0x24f   :  { %1252 = vst [vmem:[#allocation9 + $0x8] sm:$0xff] %v1246_v14 }
 0x250   :  { %v1702_v4 = vpop.eup %1701 }
 0x251   :  { %v1248_v5 = vmul.f32 0.6931472, %v1702_v4 }
 0x253   :  { %1253 = vst [vmem:[#allocation9 + $0x10] sm:$0xff] %v1248_v5 }
 0x254   :  { %v1704_v15 = vpop.eup %1703 }
 0x255   :  { %v1250_v16 = vmul.f32 0.6931472, %v1704_v15 }
 0x257   :  { %1254 = vst [vmem:[#allocation9 + $0x18] sm:$0xff] %v1250_v16 }
 0x258   :  { %1776 = shalt.err (!%p1773_p5)
}
 0x259   :  { %1266 = dma.vmem_to_hbm [thread:$0]  %s1261_s7, 512, %s1881_s4, [#allocation5], %s1796_s2, %s1796_s2, %s1797_s30  }
 0x25a   :  { %1789 = dma.done.wait [#allocation5], 512  }
 0x25b   :  { %1790 = vsyncadd [#allocation5], 4294966784 }
 0x25c   :  { %1270 = vsyncpa [#allocation4], 1 }
 0x25d   :  { %1271 = vsyncpa [#allocation7], 1 }
 0x25e   :  { %1272 = vsyncpa [#allocation5], 1 }

</bundles_post_ra>
